<compile_context>
chip_gen: v7x
topology: tpu7x:2x2x1
jax: 0.10.0
libtpu: 0.0.40
codegen_flags: <defaults>
</compile_context>

<pallas_src>
import functools
import math

import jax
import jax.numpy as jnp
from jax.experimental import pallas as pl
from jax.experimental.pallas import tpu as pltpu


def _choose_batch_tile(b, n, max_rows=256):
    """Largest divisor Bt of b with Bt*n <= max_rows, preferring >=2 grid steps."""
    divs = [d for d in range(1, b + 1) if b % d == 0]
    good = [d for d in divs if d * n <= max_rows and (b // d) >= 2]
    if good:
        return max(good)
    ok = [d for d in divs if d * n <= max_rows]
    return max(ok) if ok else 1


def _fastformer_kernel(x_ref, mask_ref, wqkv_ref, wr_ref, alpha_ref, beta_ref,
                       out_ref, q_scratch, *, bt, n, dim, d):
    # x_ref: (Bt, N, DIM)   mask_ref: (Bt, 1, N)   wqkv_ref: (DIM, 3D)
    # wr_ref: (D, D)        alpha/beta_ref: (1, 1, D) (scale pre-folded)
    # out_ref: (Bt, N, D)   q_scratch: VMEM (Bt*N, D)
    x3 = x_ref[...]                               # (Bt, N, DIM)
    x2 = x3.reshape(bt * n, dim)                  # fill the M dimension
    keep = mask_ref[...] > 0.5                    # (Bt, 1, N) == (Bt, 1, D)
    alpha_s = alpha_ref[...]                      # (1, 1, D)
    beta_s = beta_ref[...]                        # (1, 1, D)
    mask_value = -jnp.finfo(jnp.float32).max

    # --- fused Q/K/V projection ------------------------------------------
    if dim <= 8:
        # Tiny contraction (DIM=3 by default): 3 broadcast-FMAs on the VPU
        # beat a zero-padded 128-deep MXU pass.
        qkv = x2[:, 0:1] * wqkv_ref[0:1, :]
        for k in range(1, dim):
            qkv = qkv + x2[:, k:k + 1] * wqkv_ref[k:k + 1, :]
    else:
        qkv = jnp.dot(x2, wqkv_ref[...], preferred_element_type=jnp.float32)

    query2 = qkv[:, 0 * d:1 * d]                  # (Bt*N, D)
    key2 = qkv[:, 1 * d:2 * d]
    value2 = qkv[:, 2 * d:3 * d]
    q_scratch[...] = query2                       # stash for the residual add

    q3 = query2.reshape(bt, n, d)
    k3 = key2.reshape(bt, n, d)
    v3 = value2.reshape(bt, n, d)

    # --- alpha attention (softmax over the feature axis, as in the ref) ---
    a_logits = jnp.where(keep, q3 * alpha_s, mask_value)
    a_logits = a_logits - jnp.max(a_logits, axis=-1, keepdims=True)
    a_exp = jnp.exp(a_logits)
    alpha_w = a_exp * pl.reciprocal(
        jnp.sum(a_exp, axis=-1, keepdims=True), approx=True)
    global_query = jnp.sum(q3 * alpha_w, axis=1, keepdims=True)    # (Bt, 1, D)

    p = global_query * k3                                          # (Bt, N, D)

    # --- beta attention ----------------------------------------------------
    b_logits = jnp.where(keep, p * beta_s, mask_value)
    b_logits = b_logits - jnp.max(b_logits, axis=-1, keepdims=True)
    b_exp = jnp.exp(b_logits)
    beta_w = b_exp * pl.reciprocal(
        jnp.sum(b_exp, axis=-1, keepdims=True), approx=True)
    global_key = jnp.sum(p * beta_w, axis=1, keepdims=True)        # (Bt, 1, D)

    # --- key/value interaction + output projection + residual --------------
    kvi2 = (global_key * v3).reshape(bt * n, d)                    # (Bt*N, D)
    out2 = jnp.dot(kvi2, wr_ref[...], preferred_element_type=jnp.float32)
    out2 = out2 + q_scratch[...]
    out_ref[...] = out2.reshape(bt, n, d).astype(out_ref.dtype)


def fastformer_pallas(x, mask, params, *, batch_tile=None):
    """x: (B, N, DIM) f32, mask: (B, N) bool, params dict of weights."""
    b, n, dim = x.shape
    d = params["wq"].shape[1]
    assert n == d, "reference code's mask broadcast requires seq_len == decode_dim"
    scale = d ** (-0.5)

    bt = _choose_batch_tile(b, n) if batch_tile is None else batch_tile
    assert b % bt == 0, "batch tile must divide batch"
    grid_b = b // bt

    # Fused QKV weight, scale folded into alpha/beta (done once, outside kernel).
    w_qkv = jnp.concatenate([params["wq"], params["wk"], params["wv"]], axis=1)
    alpha_s = (params["alpha"].astype(jnp.float32) * scale).reshape(1, 1, d)
    beta_s = (params["beta"].astype(jnp.float32) * scale).reshape(1, 1, d)
    mask_f = mask.astype(jnp.float32).reshape(b, 1, n)

    kernel = functools.partial(_fastformer_kernel, bt=bt, n=n, dim=dim, d=d)

    flops = (2 * b * n * dim * (3 * d)      # fused QKV projection
             + 2 * b * n * d * d            # wr projection
             + 16 * b * n * d)              # elementwise / softmax work
    transcendentals = 2 * b * n * d         # two exps per element
    bytes_accessed = 4 * (x.size + mask_f.size + w_qkv.size
                          + params["wr"].size + 2 * d + b * n * d)

    return pl.pallas_call(
        kernel,
        out_shape=jax.ShapeDtypeStruct((b, n, d), jnp.float32),
        grid_spec=pltpu.PrefetchScalarGridSpec(
            num_scalar_prefetch=0,
            grid=(grid_b,),
            in_specs=[
                pl.BlockSpec((bt, n, dim), lambda i: (i, 0, 0)),   # x
                pl.BlockSpec((bt, 1, n), lambda i: (i, 0, 0)),     # mask
                pl.BlockSpec((dim, 3 * d), lambda i: (0, 0)),      # w_qkv
                pl.BlockSpec((d, d), lambda i: (0, 0)),            # wr
                pl.BlockSpec((1, 1, d), lambda i: (0, 0, 0)),      # alpha*scale
                pl.BlockSpec((1, 1, d), lambda i: (0, 0, 0)),      # beta*scale
            ],
            out_specs=pl.BlockSpec((bt, n, d), lambda i: (i, 0, 0)),
            scratch_shapes=[pltpu.VMEM((bt * n, d), jnp.float32)],  # query stash
        ),
        compiler_params=pltpu.CompilerParams(
            dimension_semantics=("parallel",),
            vmem_limit_bytes=32 * 1024 * 1024,   # tiny blocks; safe on v5e/v6e/v7x
        ),
        cost_estimate=pl.CostEstimate(
            flops=flops,
            transcendentals=transcendentals,
            bytes_accessed=bytes_accessed),
    )(x, mask_f, w_qkv, params["wr"], alpha_s, beta_s)


def fastformer_reference(x, mask, params):
    """Pure-JAX reference mirroring the PyTorch forward."""
    d = params["wq"].shape[1]
    scale = d ** (-0.5)
    mask_value = -jnp.finfo(x.dtype).max
    q = x @ params["wq"]
    k = x @ params["wk"]
    v = x @ params["wv"]
    keep = mask[:, None, :]                                     # (b,1,n) == (b,1,d)
    a = jnp.where(keep, q * params["alpha"] * scale, mask_value)
    a = jax.nn.softmax(a, axis=-1)
    gq = jnp.sum(q * a, axis=1, keepdims=True)                  # (b,1,d)
    p = gq * k
    bw = jnp.where(keep, p * params["beta"] * scale, mask_value)
    bw = jax.nn.softmax(bw, axis=-1)
    gk = jnp.sum(p * bw, axis=1, keepdims=True)                 # (b,1,d)
    kv = gk * v
    return kv @ params["wr"] + q


if __name__ == "__main__":
    # Shapes consistent with the module defaults: dim=3, decode_dim=16.
    # N must equal D (see note above).  B=8 so the batch-tiled grid has 2 steps.
    B, N, DIM, D = 8, 16, 3, 16

    key = jax.random.PRNGKey(0)
    kx, kq, kk, kv_, kr, ka, kb = jax.random.split(key, 7)

    x = jax.random.normal(kx, (B, N, DIM), dtype=jnp.float32)
    # mask: mostly True, a few masked-out entries
    mask = jnp.ones((B, N), dtype=bool)
    mask = mask.at[1, -3:].set(False).at[5, :2].set(False)

    bound_in = 1.0 / math.sqrt(DIM)
    bound_r = 1.0 / math.sqrt(D)
    params = {
        # nn.Linear(dim, decode_dim, bias=False) weights, pre-transposed to (in, out)
        "wq": jax.random.uniform(kq, (DIM, D), jnp.float32, -bound_in, bound_in),
        "wk": jax.random.uniform(kk, (DIM, D), jnp.float32, -bound_in, bound_in),
        "wv": jax.random.uniform(kv_, (DIM, D), jnp.float32, -bound_in, bound_in),
        "wr": jax.random.uniform(kr, (D, D), jnp.float32, -bound_r, bound_r),
        # nn.Parameter(torch.randn(decode_dim))
        "alpha": jax.random.normal(ka, (D,), jnp.float32),
        "beta": jax.random.normal(kb, (D,), jnp.float32),
    }

    out = fastformer_pallas(x, mask, params)
    out = jax.block_until_ready(out)

    ref = fastformer_reference(x, mask, params)
    assert out.shape == (B, N, D)
    # Tolerance accounts for the EUP approximate reciprocal in both softmaxes.
    assert jnp.allclose(out, ref, atol=2e-3, rtol=2e-3), "mismatch vs JAX reference"

    print("KERNEL_OK")
</pallas_src>

<mosaic_0001>
module attributes {stable_mosaic.version = 11 : i64} {
  func.func @_fastformer_kernel(%arg0: i32, %arg1: memref<4x16x3xf32, #tpu.memory_space<vmem>>, %arg2: memref<4x1x16xf32, #tpu.memory_space<vmem>>, %arg3: memref<3x48xf32, #tpu.memory_space<vmem>>, %arg4: memref<16x16xf32, #tpu.memory_space<vmem>>, %arg5: memref<1x1x16xf32, #tpu.memory_space<vmem>>, %arg6: memref<1x1x16xf32, #tpu.memory_space<vmem>>, %arg7: memref<4x16x16xf32, #tpu.memory_space<vmem>>, %arg8: memref<64x16xf32, #tpu.memory_space<vmem>>) attributes {dimension_semantics = [#tpu.dimension_semantics<parallel>], iteration_bounds = array<i64: 2>, scalar_prefetch = 0 : i64, scratch_operands = 1 : i64, tpu.core_type = #tpu.core_type<tc>, window_params = [{transform_indices = @transform_0, window_bounds = array<i64: 4, 16, 3>}, {transform_indices = @transform_1, window_bounds = array<i64: 4, 1, 16>}, {pipeline_mode = #tpu.pipeline_mode<synchronous>, transform_indices = @transform_2, window_bounds = array<i64: 3, 48>}, {pipeline_mode = #tpu.pipeline_mode<synchronous>, transform_indices = @transform_3, window_bounds = array<i64: 16, 16>}, {pipeline_mode = #tpu.pipeline_mode<synchronous>, transform_indices = @transform_4, window_bounds = array<i64: 1, 1, 16>}, {pipeline_mode = #tpu.pipeline_mode<synchronous>, transform_indices = @transform_5, window_bounds = array<i64: 1, 1, 16>}, {transform_indices = @transform_6, window_bounds = array<i64: 4, 16, 16>}]} {
    %c0 = arith.constant 0 : index
    %c0_0 = arith.constant 0 : index
    %c0_1 = arith.constant 0 : index
    %0 = vector.load %arg1[%c0, %c0_0, %c0_1] : memref<4x16x3xf32, #tpu.memory_space<vmem>>, vector<4x16x3xf32>
    %1 = vector.shape_cast %0 : vector<4x16x3xf32> to vector<64x3xf32>
    %c0_2 = arith.constant 0 : index
    %c0_3 = arith.constant 0 : index
    %c0_4 = arith.constant 0 : index
    %2 = vector.load %arg2[%c0_2, %c0_3, %c0_4] : memref<4x1x16xf32, #tpu.memory_space<vmem>>, vector<4x1x16xf32>
    %cst = arith.constant 5.000000e-01 : f32
    %3 = vector.broadcast %cst : f32 to vector<4x1x16xf32>
    %4 = arith.cmpf ogt, %2, %3 : vector<4x1x16xf32>
    %c0_5 = arith.constant 0 : index
    %c0_6 = arith.constant 0 : index
    %c0_7 = arith.constant 0 : index
    %5 = vector.load %arg5[%c0_5, %c0_6, %c0_7] : memref<1x1x16xf32, #tpu.memory_space<vmem>>, vector<1x1x16xf32>
    %c0_8 = arith.constant 0 : index
    %c0_9 = arith.constant 0 : index
    %c0_10 = arith.constant 0 : index
    %6 = vector.load %arg6[%c0_8, %c0_9, %c0_10] : memref<1x1x16xf32, #tpu.memory_space<vmem>>, vector<1x1x16xf32>
    %7 = vector.extract_strided_slice %1 {offsets = [0, 0], sizes = [64, 1], strides = [1, 1]} : vector<64x3xf32> to vector<64x1xf32>
    %c0_11 = arith.constant 0 : index
    %c0_12 = arith.constant 0 : index
    %8 = vector.load %arg3[%c0_11, %c0_12] : memref<3x48xf32, #tpu.memory_space<vmem>>, vector<1x48xf32>
    %9 = vector.broadcast %7 : vector<64x1xf32> to vector<64x48xf32>
    %10 = vector.broadcast %8 : vector<1x48xf32> to vector<64x48xf32>
    %11 = arith.mulf %9, %10 : vector<64x48xf32>
    %12 = vector.extract_strided_slice %1 {offsets = [0, 1], sizes = [64, 1], strides = [1, 1]} : vector<64x3xf32> to vector<64x1xf32>
    %c1 = arith.constant 1 : index
    %c0_13 = arith.constant 0 : index
    %13 = vector.load %arg3[%c1, %c0_13] : memref<3x48xf32, #tpu.memory_space<vmem>>, vector<1x48xf32>
    %14 = vector.broadcast %12 : vector<64x1xf32> to vector<64x48xf32>
    %15 = vector.broadcast %13 : vector<1x48xf32> to vector<64x48xf32>
    %16 = arith.mulf %14, %15 : vector<64x48xf32>
    %17 = arith.addf %11, %16 : vector<64x48xf32>
    %18 = vector.extract_strided_slice %1 {offsets = [0, 2], sizes = [64, 1], strides = [1, 1]} : vector<64x3xf32> to vector<64x1xf32>
    %c2 = arith.constant 2 : index
    %c0_14 = arith.constant 0 : index
    %19 = vector.load %arg3[%c2, %c0_14] : memref<3x48xf32, #tpu.memory_space<vmem>>, vector<1x48xf32>
    %20 = vector.broadcast %18 : vector<64x1xf32> to vector<64x48xf32>
    %21 = vector.broadcast %19 : vector<1x48xf32> to vector<64x48xf32>
    %22 = arith.mulf %20, %21 : vector<64x48xf32>
    %23 = arith.addf %17, %22 : vector<64x48xf32>
    %24 = vector.extract_strided_slice %23 {offsets = [0, 0], sizes = [64, 16], strides = [1, 1]} : vector<64x48xf32> to vector<64x16xf32>
    %25 = vector.extract_strided_slice %23 {offsets = [0, 16], sizes = [64, 16], strides = [1, 1]} : vector<64x48xf32> to vector<64x16xf32>
    %26 = vector.extract_strided_slice %23 {offsets = [0, 32], sizes = [64, 16], strides = [1, 1]} : vector<64x48xf32> to vector<64x16xf32>
    %c0_15 = arith.constant 0 : index
    %c0_16 = arith.constant 0 : index
    %27 = vector.load %arg8[%c0_15, %c0_16] : memref<64x16xf32, #tpu.memory_space<vmem>>, vector<64x16xf32>
    tpu.vector_store %arg8[%c0_15, %c0_16], %24 {strides = array<i32>} : memref<64x16xf32, #tpu.memory_space<vmem>>, vector<64x16xf32>,
    %28 = vector.shape_cast %24 : vector<64x16xf32> to vector<4x16x16xf32>
    %29 = vector.shape_cast %25 : vector<64x16xf32> to vector<4x16x16xf32>
    %30 = vector.shape_cast %26 : vector<64x16xf32> to vector<4x16x16xf32>
    %31 = vector.broadcast %5 : vector<1x1x16xf32> to vector<4x16x16xf32>
    %32 = arith.mulf %28, %31 : vector<4x16x16xf32>
    %cst_17 = arith.constant -3.40282347E+38 : f32
    %33 = vector.shape_cast %4 : vector<4x1x16xi1> to vector<4x1x16xi1>
    %34 = vector.broadcast %33 : vector<4x1x16xi1> to vector<4x16x16xi1>
    %35 = vector.broadcast %cst_17 : f32 to vector<4x16x16xf32>
    %36 = arith.select %34, %32, %35 : vector<4x16x16xi1>, vector<4x16x16xf32>
    %cst_18 = arith.constant dense<0xFF800000> : vector<4x16xf32>
    %37 = vector.multi_reduction <maximumf>, %36, %cst_18 [2] : vector<4x16x16xf32> to vector<4x16xf32>
    %38 = vector.shape_cast %37 : vector<4x16xf32> to vector<4x16x1xf32>
    %39 = vector.broadcast %38 : vector<4x16x1xf32> to vector<4x16x16xf32>
    %40 = arith.subf %36, %39 : vector<4x16x16xf32>
    %41 = math.exp %40 : vector<4x16x16xf32>
    %cst_19 = arith.constant dense<0.000000e+00> : vector<4x16xf32>
    %42 = vector.multi_reduction <add>, %41, %cst_19 [2] : vector<4x16x16xf32> to vector<4x16xf32>
    %43 = vector.shape_cast %42 : vector<4x16xf32> to vector<4x16x1xf32>
    %44 = tpu.reciprocal %43 {approx = true} : vector<4x16x1xf32> -> vector<4x16x1xf32>
    %45 = vector.broadcast %44 : vector<4x16x1xf32> to vector<4x16x16xf32>
    %46 = arith.mulf %41, %45 : vector<4x16x16xf32>
    %47 = arith.mulf %28, %46 : vector<4x16x16xf32>
    %cst_20 = arith.constant dense<0.000000e+00> : vector<4x16xf32>
    %48 = vector.multi_reduction <add>, %47, %cst_20 [1] : vector<4x16x16xf32> to vector<4x16xf32>
    %49 = vector.shape_cast %48 : vector<4x16xf32> to vector<4x1x16xf32>
    %50 = vector.broadcast %49 : vector<4x1x16xf32> to vector<4x16x16xf32>
    %51 = arith.mulf %50, %29 : vector<4x16x16xf32>
    %52 = vector.broadcast %6 : vector<1x1x16xf32> to vector<4x16x16xf32>
    %53 = arith.mulf %51, %52 : vector<4x16x16xf32>
    %cst_21 = arith.constant -3.40282347E+38 : f32
    %54 = vector.shape_cast %4 : vector<4x1x16xi1> to vector<4x1x16xi1>
    %55 = vector.broadcast %54 : vector<4x1x16xi1> to vector<4x16x16xi1>
    %56 = vector.broadcast %cst_21 : f32 to vector<4x16x16xf32>
    %57 = arith.select %55, %53, %56 : vector<4x16x16xi1>, vector<4x16x16xf32>
    %cst_22 = arith.constant dense<0xFF800000> : vector<4x16xf32>
    %58 = vector.multi_reduction <maximumf>, %57, %cst_22 [2] : vector<4x16x16xf32> to vector<4x16xf32>
    %59 = vector.shape_cast %58 : vector<4x16xf32> to vector<4x16x1xf32>
    %60 = vector.broadcast %59 : vector<4x16x1xf32> to vector<4x16x16xf32>
    %61 = arith.subf %57, %60 : vector<4x16x16xf32>
    %62 = math.exp %61 : vector<4x16x16xf32>
    %cst_23 = arith.constant dense<0.000000e+00> : vector<4x16xf32>
    %63 = vector.multi_reduction <add>, %62, %cst_23 [2] : vector<4x16x16xf32> to vector<4x16xf32>
    %64 = vector.shape_cast %63 : vector<4x16xf32> to vector<4x16x1xf32>
    %65 = tpu.reciprocal %64 {approx = true} : vector<4x16x1xf32> -> vector<4x16x1xf32>
    %66 = vector.broadcast %65 : vector<4x16x1xf32> to vector<4x16x16xf32>
    %67 = arith.mulf %62, %66 : vector<4x16x16xf32>
    %68 = arith.mulf %51, %67 : vector<4x16x16xf32>
    %cst_24 = arith.constant dense<0.000000e+00> : vector<4x16xf32>
    %69 = vector.multi_reduction <add>, %68, %cst_24 [1] : vector<4x16x16xf32> to vector<4x16xf32>
    %70 = vector.shape_cast %69 : vector<4x16xf32> to vector<4x1x16xf32>
    %71 = vector.broadcast %70 : vector<4x1x16xf32> to vector<4x16x16xf32>
    %72 = arith.mulf %71, %30 : vector<4x16x16xf32>
    %73 = vector.shape_cast %72 : vector<4x16x16xf32> to vector<64x16xf32>
    %c0_25 = arith.constant 0 : index
    %c0_26 = arith.constant 0 : index
    %74 = vector.load %arg4[%c0_25, %c0_26] : memref<16x16xf32, #tpu.memory_space<vmem>>, vector<16x16xf32>
    %cst_27 = arith.constant dense<0.000000e+00> : vector<64x16xf32>
    %75 = tpu.matmul %73, %74, %cst_27 {dimension_numbers = #tpu.dot_dimension_numbers<[1], [0], [0], [1], [0, 0, 1, 1], [], []>} : vector<64x16xf32>, vector<16x16xf32>, vector<64x16xf32> -> vector<64x16xf32>
    %c0_28 = arith.constant 0 : index
    %c0_29 = arith.constant 0 : index
    %76 = vector.load %arg8[%c0_28, %c0_29] : memref<64x16xf32, #tpu.memory_space<vmem>>, vector<64x16xf32>
    %77 = arith.addf %75, %76 : vector<64x16xf32>
    %78 = vector.shape_cast %77 : vector<64x16xf32> to vector<4x16x16xf32>
    %c0_30 = arith.constant 0 : index
    %c0_31 = arith.constant 0 : index
    %c0_32 = arith.constant 0 : index
    %79 = vector.load %arg7[%c0_30, %c0_31, %c0_32] : memref<4x16x16xf32, #tpu.memory_space<vmem>>, vector<4x16x16xf32>
    tpu.vector_store %arg7[%c0_30, %c0_31, %c0_32], %78 {strides = array<i32>} : memref<4x16x16xf32, #tpu.memory_space<vmem>>, vector<4x16x16xf32>,
    return
  }
  func.func @transform_0(%arg0: i32) -> (i32, i32, i32) {
    %c0_i32 = arith.constant 0 : i32
    %c0_i32_0 = arith.constant 0 : i32
    %c0_i32_1 = arith.constant 0 : i32
    return %arg0, %c0_i32, %c0_i32_0 : i32, i32, i32
  }
  func.func @transform_1(%arg0: i32) -> (i32, i32, i32) {
    %c0_i32 = arith.constant 0 : i32
    %c0_i32_0 = arith.constant 0 : i32
    %c0_i32_1 = arith.constant 0 : i32
    return %arg0, %c0_i32, %c0_i32_0 : i32, i32, i32
  }
  func.func @transform_2(%arg0: i32) -> (i32, i32) {
    %c0_i32 = arith.constant 0 : i32
    %c0_i32_0 = arith.constant 0 : i32
    %c0_i32_1 = arith.constant 0 : i32
    return %c0_i32, %c0_i32_0 : i32, i32
  }
  func.func @transform_3(%arg0: i32) -> (i32, i32) {
    %c0_i32 = arith.constant 0 : i32
    %c0_i32_0 = arith.constant 0 : i32
    %c0_i32_1 = arith.constant 0 : i32
    return %c0_i32, %c0_i32_0 : i32, i32
  }
  func.func @transform_4(%arg0: i32) -> (i32, i32, i32) {
    %c0_i32 = arith.constant 0 : i32
    %c0_i32_0 = arith.constant 0 : i32
    %c0_i32_1 = arith.constant 0 : i32
    %c0_i32_2 = arith.constant 0 : i32
    return %c0_i32, %c0_i32_0, %c0_i32_1 : i32, i32, i32
  }
  func.func @transform_5(%arg0: i32) -> (i32, i32, i32) {
    %c0_i32 = arith.constant 0 : i32
    %c0_i32_0 = arith.constant 0 : i32
    %c0_i32_1 = arith.constant 0 : i32
    %c0_i32_2 = arith.constant 0 : i32
    return %c0_i32, %c0_i32_0, %c0_i32_1 : i32, i32, i32
  }
  func.func @transform_6(%arg0: i32) -> (i32, i32, i32) {
    %c0_i32 = arith.constant 0 : i32
    %c0_i32_0 = arith.constant 0 : i32
    %c0_i32_1 = arith.constant 0 : i32
    return %arg0, %c0_i32, %c0_i32_0 : i32, i32, i32
  }
}

</mosaic_0001>

<bundles_post_ra>
// kernel: tpu_custom_call.1
= control target key start
LH: loop header
LB: loop body
LE: loop exit
PB: predicated region body
PF: predicated region fallthrough
CT: control target
= control target key end

     0   :  { %11 = vsyncpa [#allocation4], 0  ;;  %s1890_s0 = inlined_call_operand.vmem [shape: f32[8,16,3], index: 0, kind: input, shape index: {}]   ;;  %s1891_s1 = inlined_call_operand.vmem [shape: f32[8,1,16], index: 1, kind: input, shape index: {}]   ;;  %s1892_s2 = inlined_call_operand.vmem [shape: f32[3,48], index: 2, kind: input, shape index: {}]   ;;  %s1893_s3 = inlined_call_operand.vmem [shape: f32[16,16], index: 3, kind: input, shape index: {}]   ;;  %s1894_s4 = inlined_call_operand.vmem [shape: f32[1,1,16], index: 4, kind: input, shape index: {}]   ;;  %s1895_s5 = inlined_call_operand.vmem [shape: f32[1,1,16], index: 5, kind: input, shape index: {}]   ;;  %s1896_s6 = inlined_call_operand.hbm [shape: f32[8,16,16], index: 6, kind: output, shape index: {}]  }
   0x1   :  { %13 = vsyncpa [#allocation4 + $0x1], 0  ;;  %s1387_s21 = smov 0   ;;  %s1389_s22 = smov 0  }
   0x2   :  { %s1391_s23 = smov 0   ;;  %s1393_s24 = smov 0  }
   0x3 LB: > { %s1408_s25 = sadd.s32 4294967295, %s1342_s24   ;;  %s1098_s26 = sadd.s32 4294967294, %s1342_s24   ;;  %s1342_s24 = sphi %s1393_s24, %s1910_s24   ;;  %s1338_s23 = sphi %s1391_s23, %s1909_s23   ;;  %s1334_s22 = sphi %s1389_s22, %s1908_s22   ;;  %s1330_s21 = sphi %s1387_s21, %s1907_s21  }
   0x4   : > { %s1412_s27 = sadd.s32 1, %s1342_s24   ;;  %s162_s28 = sadd.s32 1, %s1338_s23 }
   0x5   : > { %s159_s29 = ssub.s32 %s1342_s24, %s1412_s27  ;;  %p172_p0 = scmp.ne.s32.totalorder %s1338_s23, %s1334_s22 }
   0x6   : > { %p160_p1 = scmp.eq.s32.totalorder %s159_s29, 0  ;;  %p173_p2 = scmp.eq.s32.totalorder %s1408_s25, 1 }
   0x7   : > { %p178_p3 = scmp.ne.s32.totalorder %s1334_s22, %s1330_s21  ;;  %p179_p4 = scmp.eq.s32.totalorder %s1098_s26, 1 }
   0x8   : > { %s1423_s30 = scalar_select %p160_p1, %s1338_s23, %s162_s28  }
   0x9   : > { %p1425_p5 = por %p173_p2, %p172_p0  ;;  %p1429_p6 = por %p179_p4, %p178_p3 }
   0xa   : > { %p1101_p7 = scmp.ge.s32.totalorder %s1342_s24, 1  ;;  %p227_p8 = scmp.lt.s32.totalorder %s1342_s24, 3 }
   0xc   : > { %p228_p9 = pnand %p1101_p7, %p227_p8 }
   0xd   : > { %s1103_s9 = sshll.u32 (!%p228_p9), %s1408_s25, 2  ;;  %v1344_v0 = vmov (!%p228_p9), 0   ;;  %v1345_v6 = vmov (!%p228_p9), 1   ;;  %v1346_v8 = vmov (!%p228_p9), 2   ;;  %v479_v23 = vlaneseq (!%p228_p9)  ;;  %v1467_v30 = vld [vmem:[%s1892_s2 + $0x2] ss:$0 sm:$0xff] (!%p228_p9) }
   0xe   : > { %231 = sbr.rel (%p228_p9) target bundleno = 1167 (0x48f), region = 44  ;;  %1208 = vset.pattern.permute.xlu1 (!%p228_p9), %v1344_v0  ;;  %1207 = vset.pattern.permute.xlu0 (!%p228_p9), %v1344_v0  ;;  %p263_p10 = scmp.lt.s32.totalorder (!%p228_p9), %s1103_s9, 7  ;;  %v1472_v31 = vld [vmem:[%s1892_s2] ss:$0 sm:$0xff] (!%p228_p9)  ;;  %v1477_v32 = vld [vmem:[%s1892_s2 + $0x1] ss:$0 sm:$0xff] (!%p228_p9) }
   0xf   : > { %v480_v26 = vshrl.u32 (!%p228_p9), %v479_v23, 7  ;;  %vm452_vm4 = vcmask (!%p228_p9), 130048   ;;  %v1488_v43 = vld [vmem:[%s1894_s4] ss:$0 sm:$0xff] (!%p228_p9)  ;;  %s259_s18 = sand.u32 (!%p228_p9), 1, %s1334_s22   ;;  %s1128_s26 = sshll.u32 (!%p228_p9), %s1408_s25, 10 }
  0x10   : > { %s1102_s19 = sshll.u32 (!%p228_p9), %s259_s18, 6  ;;  %s1849_s25 = scalar_lea.sflag (!%p228_p9), [#allocation4], %s259_s18 }
  0x11   : > { %v1462_v29 = vsub.s32 (!%p228_p9), 0, %v480_v26  ;;  %s261_s20 = scalar_lea.vmem (!%p228_p9), [#allocation3], %s1102_s19  ;;  %s1349_s12 = smov (!%p228_p9), [#allocation3]  }
  0x12   : > { %s1027_s28 = sshll.u32 (!%p228_p9), %s261_s20, 4  ;;  %s1843_s28 = int_to_ptr.vmem [resolvable:$true] %s1027_s28 }
  0x13   : > { %s1280_s11 = scalar_lea.vmem (!%p228_p9), %s1843_s28, 1024 }
  0x14   : > { %p1281_p11 = scmp.ne.s32.totalorder (!%p228_p9), %s1843_s28, %s1280_s11 }
  0x15   : > { %s1912_s9 = smov (!%p263_p10, %s1103_s9), 7 }
  0x16   : > { %s1126_s10 = sshll.u32 %s1912_s9, 4  ;;  %s272_s16 = scalar_lea.vmem %s1891_s1, %s1912_s9 }
  0x17   : > { %s1439_s13 = scalar_lea.vmem %s1890_s0, %s1126_s10  ;;  %v283_v9 = vld [vmem:[%s272_s16] sm:$0x1]  ;;  %v285_v12 = vld [vmem:[%s272_s16 + $0x2] sm:$0x1]  ;;  %v284_v15 = vld [vmem:[%s272_s16 + $0x1] sm:$0x1]  ;;  %p1282_p12 = pnand %p1281_p11, %p1425_p5 }
  0x18   : > { %v279_v1 = vld [vmem:[%s1439_s13 + $0x20] sm:$0xff]  ;;  %v280_v3 = vld [vmem:[%s1439_s13 + $0x28] sm:$0xff]  ;;  %v277_v5 = vld [vmem:[%s1439_s13 + $0x10] sm:$0xff]  ;;  %vm287_vm0 = vcmp.gt.f32.partialorder %v283_v9, 0.5  ;;  %vm289_vm1 = vcmp.gt.f32.partialorder %v285_v12, 0.5  ;;  %vm288_vm2 = vcmp.gt.f32.partialorder %v284_v15, 0.5 }
  0x19   : > { %v275_v2 = vld [vmem:[%s1439_s13] sm:$0xff]  ;;  %316 = vperm.xlu1 %1208, %v279_v1   ;;  %v276_v4 = vld [vmem:[%s1439_s13 + $0x8] sm:$0xff]  ;;  %v282_v7 = vld [vmem:[%s1439_s13 + $0x38] sm:$0xff]  ;;  %v475_v10 = vsel %vm287_vm0, 1, %v1344_v0  ;;  %v1451_v13 = vsel %vm289_vm1, 1, %v1344_v0  ;;  %v1454_v16 = vsel %vm288_vm2, 1, %v1344_v0  ;;  %p1283_p13 = pneg %p1282_p12 }
  0x1a   : > { %296 = vperm.xlu0 %1207, %v275_v2   ;;  %v278_v11 = vld [vmem:[%s1439_s13 + $0x18] sm:$0xff]  ;;  %v281_v14 = vld [vmem:[%s1439_s13 + $0x30] sm:$0xff]  ;;  %v286_v17 = vld [vmem:[%s272_s16 + $0x3] sm:$0x1]  ;;  %v482_v39 = vrot.slane %v475_v10, %v1462_v29  ;;  %v490_v61 = vrot.slane %v1451_v13, %v1462_v29  ;;  %s1347_s10 = smov 112   ;;  %s1348_s13 = smov 96  }
  0x1b   : > { %vm290_vm3 = vcmp.gt.f32.partialorder %v286_v17, 0.5 }
  0x1c   : > { %v1456_v18 = vsel %vm290_vm3, 1, %v1344_v0  ;;  %vm1494_vm5 = vcmp.eq.s32.totalorder %v482_v39, 1  ;;  %vm1525_vm6 = vcmp.eq.s32.totalorder %v490_v61, 1 }
  0x1d   : > { %321 = vperm.xlu1 %1208, %v280_v3  }
  0x1e   : > { %301 = vperm.xlu0 %1207, %v276_v4  }
  0x21   : > { %1209 = vset.pattern.permute.xlu1 %v1345_v6 }
  0x22   : > { %306 = vperm.xlu0 %1207, %v277_v5   ;;  %352 = vperm.xlu1 %1209, %v276_v4  }
  0x26   : > { %331 = vperm.xlu0 %1207, %v282_v7   ;;  %364 = vperm.xlu1 %1209, %v279_v1  }
  0x2a   : > { %1212 = vset.pattern.permute.xlu0 %v1345_v6  ;;  %1210 = vset.pattern.permute.xlu1 %v1346_v8 }
  0x2b   : > { %348 = vperm.xlu0 %1212, %v275_v2   ;;  %401 = vperm.xlu1 %1210, %v275_v2  }
  0x2f   : > { %368 = vperm.xlu0 %1212, %v280_v3   ;;  %417 = vperm.xlu1 %1210, %v279_v1  }
  0x33   : > { %360 = vperm.xlu0 %1212, %v278_v11   ;;  %421 = vperm.xlu1 %1210, %v280_v3  }
  0x37   : > { %1214 = vset.pattern.permute.xlu0 %v1346_v8  ;;  %1211 = vset.pattern.permute.xlu1 %v1344_v0 }
  0x38   : > { %405 = vperm.xlu0 %1214, %v276_v4   ;;  %311 = vperm.xlu1 %1211, %v278_v11  }
  0x3c   : > { %409 = vperm.xlu0 %1214, %v277_v5   ;;  %326 = vperm.xlu1 %1211, %v281_v14  }
  0x40   : > { %429 = vperm.xlu0 %1214, %v282_v7   ;;  %1213 = vset.pattern.permute.xlu1 %v1345_v6 }
  0x41   : > { %356 = vperm.xlu1 %1213, %v277_v5  }
  0x45   : > { %372 = vperm.xlu1 %1213, %v281_v14  }
  0x49   : > { %376 = vperm.xlu1 %1213, %v282_v7  }
  0x4d   : > { %1215 = vset.pattern.permute.xlu1 %v1346_v8 }
  0x4e   : > { %413 = vperm.xlu1 %1215, %v278_v11  }
  0x52   : > { %425 = vperm.xlu1 %1215, %v281_v14  }
  0x98   : > { %v317_v19 = vpop.permute.xlu1 %316 }
  0x99   : > { %v297_v20 = vpop.permute.xlu0 %296  ;;  %v342_v41 = vmul.f32 %v1472_v31, %v317_v19 }
  0x9a   : > { %v338_v34 = vmul.f32 %v1472_v31, %v297_v20 }
  0x9c   : > { %v322_v21 = vpop.permute.xlu1 %321 }
  0x9d   : > { %v302_v22 = vpop.permute.xlu0 %301  ;;  %v343_v51 = vmul.f32 %v1472_v31, %v322_v21 }
  0x9e   : > { %v339_v54 = vmul.f32 %v1472_v31, %v302_v22  ;;  %v486_v22 = vrot.slane %v1454_v16, %v1462_v29 }
  0xa0   : > { %vm1563_vm7 = vcmp.eq.s32.totalorder %v486_v22, 1 }
  0xa1   : > { %v1458_v24 = vpop.permute.xlu0 %306  ;;  %v353_v25 = vpop.permute.xlu1 %352 }
  0xa2   : > { %v384_v57 = vmul.f32 %v1477_v32, %v353_v25  ;;  %v340_v17 = vmul.f32 %v1472_v31, %v1458_v24 }
  0xa4   : > { %v392_v0 = vadd.f32 %v384_v57, %v339_v54 }
  0xa5   : > { %v1460_v27 = vpop.permute.xlu0 %331  ;;  %v365_v28 = vpop.permute.xlu1 %364 }
  0xa6   : > { %v387_v37 = vmul.f32 %v1477_v32, %v365_v28  ;;  %v345_v16 = vmul.f32 %v1472_v31, %v1460_v27 }
  0xa8   : > { %v395_v46 = vadd.f32 %v387_v37, %v342_v41 }
  0xaa   : > { %v349_v33 = vpop.permute.xlu0 %348  ;;  %v402_v36 = vpop.permute.xlu1 %401 }
  0xab   : > { %v383_v35 = vmul.f32 %v1477_v32, %v349_v33  ;;  %v436_v38 = vmul.f32 %v1467_v30, %v402_v36 }
  0xad   : > { %v391_v40 = vadd.f32 %v383_v35, %v338_v34 }
  0xae   : > { %v369_v42 = vpop.permute.xlu0 %368  ;;  %v418_v45 = vpop.permute.xlu1 %417 }
  0xaf   : > { %v1490_v44 = vadd.f32 %v436_v38, %v391_v40  ;;  %v388_v47 = vmul.f32 %v1477_v32, %v369_v42  ;;  %v440_v48 = vmul.f32 %v1467_v30, %v418_v45 }
  0xb1   : > { %453 = vst.msk [vmem:[#allocation2] sm:$0xff] %vm452_vm4, %v1490_v44  ;;  %v467_v50 = vmul.f32 %v1488_v43, %v1490_v44  ;;  %v1503_v52 = vadd.f32 %v440_v48, %v395_v46  ;;  %v396_v58 = vadd.f32 %v388_v47, %v343_v51  ;;  %v494_v48 = vrot.slane %v1456_v18, %v1462_v29 }
  0xb2   : > { %v361_v53 = vpop.permute.xlu0 %360  ;;  %v422_v55 = vpop.permute.xlu1 %421 }
  0xb3   : > { %v1508_v56 = vsel %vm1494_vm5, %v467_v50, -3.4028235e+38  ;;  %457 = vst.msk [vmem:[#allocation2 + $0x20] sm:$0xff] %vm452_vm4, %v1503_v52  ;;  %v441_v59 = vmul.f32 %v1467_v30, %v422_v55  ;;  %v471_v10 = vmul.f32 %v1488_v43, %v1503_v52  ;;  %v386_v37 = vmul.f32 %v1477_v32, %v361_v53 }
  0xb4   : > { %v507_v60 = vsel %vm452_vm4, %v1508_v56, -inf  ;;  %vm1598_vm8 = vcmp.eq.s32.totalorder %v494_v48, 1 }
  0xb5   : > { %508 = vmax.xlane.f32.xlu1 %v507_v60  ;;  %v1518_v62 = vadd.f32 %v441_v59, %v396_v58  ;;  %v1551_v14 = vsel %vm1525_vm6, %v471_v10, -3.4028235e+38 }
  0xb6   : > { %v519_v21 = vsel %vm452_vm4, %v1551_v14, -inf }
  0xb7   : > { %v406_v63 = vpop.permute.xlu0 %405  ;;  %458 = vst.msk [vmem:[#allocation2 + $0x28] sm:$0xff] %vm452_vm4, %v1518_v62  ;;  %v312_v2 = vpop.permute.xlu1 %311  ;;  %v472_v3 = vmul.f32 %v1488_v43, %v1518_v62 }
  0xb8   : > { %v437_v1 = vmul.f32 %v1467_v30, %v406_v63  ;;  %v341_v38 = vmul.f32 %v1472_v31, %v312_v2 }
  0xb9   : > { %v1533_v6 = vsel %vm1525_vm6, %v472_v3, -3.4028235e+38 }
  0xba   : > { %v1529_v5 = vadd.f32 %v437_v1, %v392_v0  ;;  %v522_v7 = vsel %vm452_vm4, %v1533_v6, -inf  ;;  %v394_v46 = vadd.f32 %v386_v37, %v341_v38 }
  0xbb   : > { %v327_v8 = vpop.permute.xlu1 %326  ;;  %523 = vmax.xlane.f32.xlu1 %v522_v7  ;;  %v410_v13 = vpop.permute.xlu0 %409 }
  0xbc   : > { %454 = vst.msk [vmem:[#allocation2 + $0x8] sm:$0xff] %vm452_vm4, %v1529_v5  ;;  %v468_v9 = vmul.f32 %v1488_v43, %v1529_v5  ;;  %v438_v20 = vmul.f32 %v1467_v30, %v410_v13  ;;  %v344_v50 = vmul.f32 %v1472_v31, %v327_v8 }
  0xbe   : > { %v1545_v11 = vsel %vm1494_vm5, %v468_v9, -3.4028235e+38 }
  0xbf   : > { %v510_v12 = vsel %vm452_vm4, %v1545_v11, -inf  ;;  %v430_v33 = vpop.permute.xlu0 %429 }
  0xc0   : > { %511 = vmax.xlane.f32.xlu0 %v510_v12  ;;  %v357_v15 = vpop.permute.xlu1 %356  ;;  %v443_v40 = vmul.f32 %v1467_v30, %v430_v33 }
  0xc1   : > { %v385_v19 = vmul.f32 %v1477_v32, %v357_v15 }
  0xc3   : > { %v393_v23 = vadd.f32 %v385_v19, %v340_v17 }
  0xc4   : > { %520 = vmax.xlane.f32.xlu0 %v519_v21  ;;  %v373_v25 = vpop.permute.xlu1 %372 }
  0xc5   : > { %v1561_v26 = vadd.f32 %v438_v20, %v393_v23  ;;  %v389_v27 = vmul.f32 %v1477_v32, %v373_v25 }
  0xc7   : > { %455 = vst.msk [vmem:[#allocation2 + $0x10] sm:$0xff] %vm452_vm4, %v1561_v26  ;;  %v469_v24 = vmul.f32 %v1488_v43, %v1561_v26  ;;  %v397_v54 = vadd.f32 %v389_v27, %v344_v50 }
  0xc8   : > { %v377_v34 = vpop.permute.xlu1 %376 }
  0xc9   : > { %v390_v35 = vmul.f32 %v1477_v32, %v377_v34  ;;  %v501_v36 = vsel %vm1563_vm7, %v469_v24, -3.4028235e+38 }
  0xca   : > { %v513_v39 = vsel %vm452_vm4, %v501_v36, -inf }
  0xcb   : > { %v398_v41 = vadd.f32 %v390_v35, %v345_v16  ;;  %514 = vmax.xlane.f32.xlu0 %v513_v39 }
  0xcd   : > { %v1580_v42 = vadd.f32 %v443_v40, %v398_v41  ;;  %v414_v45 = vpop.permute.xlu1 %413 }
  0xce   : > { %v439_v47 = vmul.f32 %v1467_v30, %v414_v45 }
  0xcf   : > { %460 = vst.msk [vmem:[#allocation2 + $0x38] sm:$0xff] %vm452_vm4, %v1580_v42  ;;  %v474_v57 = vmul.f32 %v1488_v43, %v1580_v42 }
  0xd0   : > { %v1589_v51 = vadd.f32 %v439_v47, %v394_v46 }
  0xd1   : > { %v426_v53 = vpop.permute.xlu1 %425  ;;  %v506_v59 = vsel %vm1598_vm8, %v474_v57, -3.4028235e+38 }
  0xd2   : > { %456 = vst.msk [vmem:[#allocation2 + $0x18] sm:$0xff] %vm452_vm4, %v1589_v51  ;;  %v442_v55 = vmul.f32 %v1467_v30, %v426_v53  ;;  %v470_v32 = vmul.f32 %v1488_v43, %v1589_v51  ;;  %v528_v63 = vsel %vm452_vm4, %v506_v59, -inf }
  0xd4   : > { %v1602_v18 = vadd.f32 %v442_v55, %v397_v54  ;;  %v502_v29 = vsel %vm1563_vm7, %v470_v32, -3.4028235e+38 }
  0xd5   : > { %v516_v31 = vsel %vm452_vm4, %v502_v29, -inf }
  0xd6   : > { %459 = vst.msk [vmem:[#allocation2 + $0x30] sm:$0xff] %vm452_vm4, %v1602_v18  ;;  %517 = vmax.xlane.f32.xlu1 %v516_v31  ;;  %v473_v30 = vmul.f32 %v1488_v43, %v1602_v18 }
  0xd8   : > { %v505_v60 = vsel %vm1598_vm8, %v473_v30, -3.4028235e+38 }
  0xd9   : > { %v525_v61 = vsel %vm452_vm4, %v505_v60, -inf }
  0xda   : > { %526 = vmax.xlane.f32.xlu0 %v525_v61  ;;  %529 = vmax.xlane.f32.xlu1 %v528_v63 }
 0x142   : > { %v509_v0 = vpop.xlane.xlu1 %508 }
 0x143   : > { %v531_v1 = vsub.f32 %v1508_v56, %v509_v0 }
 0x145   : > { %v539_v2 = vmul.f32 1.442695, %v531_v1 }
 0x147   : > { %1216 = vpow2.f32 %v539_v2 }
 0x148   : > { %v524_v3 = vpop.xlane.xlu1 %523 }
 0x149   : > { %v536_v43 = vsub.f32 %v1533_v6, %v524_v3 }
 0x14b   : > { %v549_v9 = vmul.f32 1.442695, %v536_v43 }
 0x14d   : > { %v512_v7 = vpop.xlane.xlu0 %511 }
 0x14e   : > { %v532_v8 = vsub.f32 %v1545_v11, %v512_v7 }
 0x150   : > { %v541_v10 = vmul.f32 1.442695, %v532_v8 }
 0x151   : > { %v1620_v12 = vpop.eup %1216  ;;  %v521_v13 = vpop.xlane.xlu0 %520 }
 0x152   : > { %1218 = vpow2.f32 %v541_v10  ;;  %v535_v15 = vsub.f32 %v1551_v14, %v521_v13  ;;  %v555_v17 = vsel %vm452_vm4, %v1620_v12, 0.0 }
 0x153   : > { %556 = vadd.xlane.f32.xlu0 %v555_v17  ;;  %1220 = vpow2.f32 %v549_v9 }
 0x154   : > { %v547_v56 = vmul.f32 1.442695, %v535_v15 }
 0x156   : > { %1222 = vpow2.f32 %v547_v56 }
 0x158   : > { %v515_v19 = vpop.xlane.xlu0 %514 }
 0x159   : > { %v533_v6 = vsub.f32 %v501_v36, %v515_v19 }
 0x15b   : > { %v543_v21 = vmul.f32 1.442695, %v533_v6 }
 0x15c   : > { %v1219_v20 = vpop.eup %1218 }
 0x15d   : > { %v558_v11 = vsel %vm452_vm4, %v1219_v20, 0.0  ;;  %v1221_v22 = vpop.eup %1220  ;;  %1224 = vpow2.f32 %v543_v21 }
 0x15e   : > { %559 = vadd.xlane.f32.xlu1 %v558_v11  ;;  %v570_v25 = vsel %vm452_vm4, %v1221_v22, 0.0 }
 0x160   : > { %v1223_v23 = vpop.eup %1222 }
 0x161   : > { %v567_v14 = vsel %vm452_vm4, %v1223_v23, 0.0 }
 0x162   : > { %571 = vadd.xlane.f32.xlu1 %v570_v25  ;;  %568 = vadd.xlane.f32.xlu0 %v567_v14 }
 0x163   : > { %v518_v24 = vpop.xlane.xlu1 %517 }
 0x164   : > { %v534_v33 = vsub.f32 %v502_v29, %v518_v24  ;;  %v1664_v24 = vld [vmem:[%s1895_s5] ss:$0 sm:$0xff] }
 0x166   : > { %v545_v34 = vmul.f32 1.442695, %v534_v33 }
 0x167   : > { %v1628_v16 = vpop.eup %1224  ;;  %v527_v35 = vpop.xlane.xlu0 %526 }
 0x168   : > { %1226 = vpow2.f32 %v545_v34  ;;  %v537_v36 = vsub.f32 %v505_v60, %v527_v35  ;;  %v561_v37 = vsel %vm452_vm4, %v1628_v16, 0.0  ;;  %v530_v46 = vpop.xlane.xlu1 %529 }
 0x169   : > { %562 = vadd.xlane.f32.xlu0 %v561_v37  ;;  %v538_v27 = vsub.f32 %v506_v59, %v530_v46 }
 0x16a   : > { %v551_v38 = vmul.f32 1.442695, %v537_v36 }
 0x16b   : > { %v553_v47 = vmul.f32 1.442695, %v538_v27 }
 0x16c   : > { %1228 = vpow2.f32 %v551_v38 }
 0x16d   : > { %1230 = vpow2.f32 %v553_v47 }
 0x172   : > { %v1632_v39 = vpop.eup %1226 }
 0x173   : > { %v564_v40 = vsel %vm452_vm4, %v1632_v39, 0.0 }
 0x174   : > { %565 = vadd.xlane.f32.xlu1 %v564_v40 }
 0x176   : > { %v1636_v41 = vpop.eup %1228 }
 0x177   : > { %v573_v45 = vsel %vm452_vm4, %v1636_v41, 0.0  ;;  %v1645_v48 = vpop.eup %1230 }
 0x178   : > { %574 = vadd.xlane.f32.xlu0 %v573_v45  ;;  %v576_v50 = vsel %vm452_vm4, %v1645_v48, 0.0 }
 0x185   : > { %649 = vrot.lane.b32.xlu1 %v1529_v5, %s1347_s10 }
 0x18e   : > { %647 = vrot.lane.b32.xlu0 %v1490_v44, %s1347_s10 }
 0x192   : > { %657 = vrot.lane.b32.xlu0 %v1518_v62, %s1347_s10 }
 0x196   : > { %653 = vrot.lane.b32.xlu0 %v1589_v51, %s1347_s10 }
 0x19a   : > { %661 = vrot.lane.b32.xlu0 %v1580_v42, %s1347_s10 }
 0x1a9   : > { %577 = vadd.xlane.f32.xlu1 %v576_v50 }
 0x1ba   : > { %655 = vrot.lane.b32.xlu1 %v1503_v52, %s1347_s10 }
 0x1be   : > { %651 = vrot.lane.b32.xlu1 %v1561_v26, %s1347_s10 }
 0x1c2   : > { %659 = vrot.lane.b32.xlu1 %v1602_v18, %s1347_s10  ;;  %s1841_s10 = scalar_lea.hbm %s1896_s6, %s1128_s26 }
 0x1e0   : > { %v557_v53 = vpop.xlane.xlu0 %556 }
 0x1e1   : > { %1232 = vrcp.f32 %v557_v53 }
 0x1eb   : > { %v560_v54 = vpop.xlane.xlu1 %559  ;;  %v1233_v57 = vpop.eup %1232 }
 0x1ec   : > { %1234 = vrcp.f32 %v560_v54  ;;  %v587_v29 = vmul.f32 %v1233_v57, %v1620_v12 }
 0x1ee   : > { %v595_v59 = vmul.f32 %v587_v29, %v1490_v44 }
 0x1ef   : > { %v572_v55 = vpop.xlane.xlu1 %571  ;;  %v569_v32 = vpop.xlane.xlu0 %568 }
 0x1f0   : > { %1236 = vrcp.f32 %v572_v55  ;;  %v603_v3 = vsel %vm452_vm4, %v595_v59, 0.0 }
 0x1f1   : > { %1238 = vrcp.f32 %v569_v32 }
 0x1f6   : > { %v1235_v31 = vpop.eup %1234  ;;  %v563_v63 = vpop.xlane.xlu0 %562 }
 0x1f7   : > { %v588_v30 = vmul.f32 %v1235_v31, %v1219_v20  ;;  %1240 = vrcp.f32 %v563_v63 }
 0x1f9   : > { %v596_v60 = vmul.f32 %v588_v30, %v1529_v5 }
 0x1fa   : > { %v1237_v61 = vpop.eup %1236 }
 0x1fb   : > { %v1239_v0 = vpop.eup %1238  ;;  %v592_v1 = vmul.f32 %v1237_v61, %v1221_v22  ;;  %v604_v2 = vsel %vm452_vm4, %v596_v60, 0.0 }
 0x1fc   : > { %v591_v43 = vmul.f32 %v1239_v0, %v1223_v23  ;;  %v605_v7 = vadd.f32 %v604_v2, %v603_v3 }
 0x1fd   : > { %v600_v8 = vmul.f32 %v592_v1, %v1518_v62 }
 0x1fe   : > { %v606_v9 = vrot.slane %v605_v7, 4  ;;  %v599_v10 = vmul.f32 %v591_v43, %v1503_v52 }
 0x1ff   : > { %v622_v12 = vsel %vm452_vm4, %v600_v8, 0.0 }
 0x200   : > { %v607_v13 = vadd.f32 %v606_v9, %v605_v7  ;;  %v621_v15 = vsel %vm452_vm4, %v599_v10, 0.0 }
 0x201   : > { %v623_v17 = vadd.f32 %v622_v12, %v621_v15  ;;  %v566_v56 = vpop.xlane.xlu1 %565  ;;  %v1241_v22 = vpop.eup %1240 }
 0x202   : > { %v608_v19 = vrot.slane %v607_v13, 2  ;;  %1242 = vrcp.f32 %v566_v56  ;;  %v589_v35 = vmul.f32 %v1241_v22, %v1628_v16 }
 0x203   : > { %v624_v6 = vrot.slane %v623_v17, 4 }
 0x204   : > { %v609_v20 = vadd.f32 %v608_v19, %v607_v13  ;;  %v597_v16 = vmul.f32 %v589_v35, %v1561_v26 }
 0x205   : > { %v625_v21 = vadd.f32 %v624_v6, %v623_v17  ;;  %v575_v23 = vpop.xlane.xlu0 %574  ;;  %v650_v33 = vpop.permute.xlu1 %649 }
 0x206   : > { %v610_v11 = vrot.slane %v609_v20, 1  ;;  %v612_v30 = vsel %vm452_vm4, %v597_v16, 0.0  ;;  %1244 = vrcp.f32 %v575_v23 }
 0x207   : > { %v626_v25 = vrot.slane %v625_v21, 2 }
 0x208   : > { %v611_v14 = vadd.f32 %v610_v11, %v609_v20 }
 0x209   : > { %v627_v34 = vadd.f32 %v626_v25, %v625_v21  ;;  %v648_v37 = vpop.permute.xlu0 %647 }
 0x20a   : > { %v1667_v36 = vmul.f32 %v650_v33, %v611_v14  ;;  %v1671_v45 = vmul.f32 %v648_v37, %v611_v14 }
 0x20b   : > { %v628_v38 = vrot.slane %v627_v34, 1 }
 0x20c   : > { %v686_v40 = vmul.f32 %v1664_v24, %v1667_v36  ;;  %v1243_v46 = vpop.eup %1242  ;;  %v685_v50 = vmul.f32 %v1664_v24, %v1671_v45 }
 0x20d   : > { %v629_v27 = vadd.f32 %v628_v38, %v627_v34  ;;  %v590_v47 = vmul.f32 %v1243_v46, %v1632_v39  ;;  %v658_v54 = vpop.permute.xlu0 %657 }
 0x20e   : > { %v1678_v53 = vsel %vm1494_vm5, %v686_v40, -3.4028235e+38  ;;  %v1687_v57 = vsel %vm1494_vm5, %v685_v50, -3.4028235e+38 }
 0x20f   : > { %v704_v55 = vsel %vm452_vm4, %v1678_v53, -inf  ;;  %v1683_v32 = vmul.f32 %v658_v54, %v629_v27  ;;  %v598_v39 = vmul.f32 %v590_v47, %v1589_v51  ;;  %v701_v29 = vsel %vm452_vm4, %v1687_v57, -inf }
 0x210   : > { %705 = vmax.xlane.f32.xlu0 %v704_v55  ;;  %702 = vmax.xlane.f32.xlu1 %v701_v29  ;;  %v1245_v17 = vpop.eup %1244 }
 0x211   : > { %v690_v31 = vmul.f32 %v1664_v24, %v1683_v32  ;;  %v613_v59 = vsel %vm452_vm4, %v598_v39, 0.0  ;;  %v654_v7 = vpop.permute.xlu0 %653  ;;  %v593_v6 = vmul.f32 %v1245_v17, %v1636_v41 }
 0x212   : > { %v614_v60 = vadd.f32 %v613_v59, %v612_v30 }
 0x213   : > { %v1698_v61 = vsel %vm1525_vm6, %v690_v31, -3.4028235e+38  ;;  %v601_v33 = vmul.f32 %v593_v6, %v1602_v18 }
 0x214   : > { %v615_v49 = vrot.slane %v614_v60, 4  ;;  %v716_v63 = vsel %vm452_vm4, %v1698_v61, -inf }
 0x215   : > { %717 = vmax.xlane.f32.xlu1 %v716_v63  ;;  %v630_v37 = vsel %vm452_vm4, %v601_v33, 0.0  ;;  %v662_v16 = vpop.permute.xlu0 %661 }
 0x216   : > { %v616_v0 = vadd.f32 %v615_v49, %v614_v60 }
 0x218   : > { %v617_v1 = vrot.slane %v616_v0, 2 }
 0x21a   : > { %v618_v2 = vadd.f32 %v617_v1, %v616_v0 }
 0x21c   : > { %v619_v3 = vrot.slane %v618_v2, 1 }
 0x21e   : > { %v620_v43 = vadd.f32 %v619_v3, %v618_v2 }
 0x220   : > { %v1702_v8 = vmul.f32 %v654_v7, %v620_v43 }
 0x222   : > { %v688_v9 = vmul.f32 %v1664_v24, %v1702_v8 }
 0x224   : > { %v1708_v10 = vsel %vm1563_vm7, %v688_v9, -3.4028235e+38 }
 0x225   : > { %v710_v12 = vsel %vm452_vm4, %v1708_v10, -inf }
 0x226   : > { %711 = vmax.xlane.f32.xlu1 %v710_v12 }
 0x236   : > { %v578_v13 = vpop.xlane.xlu1 %577 }
 0x237   : > { %1246 = vrcp.f32 %v578_v13 }
 0x23a   : > { %v656_v15 = vpop.permute.xlu1 %655 }
 0x23b   : > { %v1712_v56 = vmul.f32 %v656_v15, %v629_v27 }
 0x23d   : > { %v689_v19 = vmul.f32 %v1664_v24, %v1712_v56 }
 0x23e   : > { %v652_v20 = vpop.permute.xlu1 %651 }
 0x23f   : > { %v1717_v21 = vmul.f32 %v652_v20, %v620_v43  ;;  %v697_v11 = vsel %vm1525_vm6, %v689_v19, -3.4028235e+38 }
 0x240   : > { %v713_v22 = vsel %vm452_vm4, %v697_v11, -inf }
 0x241   : > { %v1247_v23 = vpop.eup %1246  ;;  %v687_v25 = vmul.f32 %v1664_v24, %v1717_v21  ;;  %714 = vmax.xlane.f32.xlu0 %v713_v22 }
 0x242   : > { %v594_v14 = vmul.f32 %v1247_v23, %v1645_v48  ;;  %v660_v54 = vpop.permute.xlu1 %659 }
 0x243   : > { %v695_v41 = vsel %vm1563_vm7, %v687_v25, -3.4028235e+38 }
 0x244   : > { %v602_v34 = vmul.f32 %v594_v14, %v1580_v42  ;;  %v707_v35 = vsel %vm452_vm4, %v695_v41, -inf }
 0x245   : > { %708 = vmax.xlane.f32.xlu0 %v707_v35 }
 0x246   : > { %v631_v4 = vsel %vm452_vm4, %v602_v34, 0.0 }
 0x247   : > { %v632_v38 = vadd.f32 %v631_v4, %v630_v37 }
 0x249   : > { %v633_v40 = vrot.slane %v632_v38, 4 }
 0x24b   : > { %v634_v46 = vadd.f32 %v633_v40, %v632_v38 }
 0x24d   : > { %v635_v27 = vrot.slane %v634_v46, 2 }
 0x24f   : > { %v636_v47 = vadd.f32 %v635_v27, %v634_v46 }
 0x251   : > { %v637_v48 = vrot.slane %v636_v47, 1 }
 0x253   : > { %v638_v50 = vadd.f32 %v637_v48, %v636_v47 }
 0x255   : > { %v1732_v28 = vmul.f32 %v660_v54, %v638_v50  ;;  %v1734_v55 = vmul.f32 %v662_v16, %v638_v50  ;;  %v865_v16 = vld [vmem:[%s1893_s3] sm:$0xff]  ;;  %v866_v54 = vld [vmem:[%s1893_s3 + $0x8] sm:$0xff] }
 0x257   : > { %v691_v39 = vmul.f32 %v1664_v24, %v1732_v28  ;;  %v692_v29 = vmul.f32 %v1664_v24, %v1734_v55 }
 0x259   : > { %v699_v31 = vsel %vm1598_vm8, %v691_v39, -3.4028235e+38  ;;  %v700_v30 = vsel %vm1598_vm8, %v692_v29, -3.4028235e+38  ;;  %v1155_v39 = vpack.c.bf16 %v866_v54, %v865_v16 }
 0x25a   : > { %v719_v59 = vsel %vm452_vm4, %v699_v31, -inf  ;;  %v722_v60 = vsel %vm452_vm4, %v700_v30, -inf }
 0x25b   : > { %720 = vmax.xlane.f32.xlu0 %v719_v59  ;;  %723 = vmax.xlane.f32.xlu1 %v722_v60 }
 0x25c   : > { %1156 = vmatprep.subr.bf16.mxu0 %v1155_v39  ;;  %1159 = vmatprep.subr.bf16.mxu1 %v1155_v39 }
 0x25d   : > { %1158 = vmatpush3.bf16.msra.mxu0 %v1155_v39  ;;  %1160 = vmatpush3.bf16.msra.mxu1 %v1155_v39 }
 0x29d   : > { %v706_v49 = vpop.xlane.xlu0 %705  ;;  %v703_v0 = vpop.xlane.xlu1 %702 }
 0x29e   : > { %v726_v63 = vsub.f32 %v1678_v53, %v706_v49  ;;  %v725_v2 = vsub.f32 %v1687_v57, %v703_v0 }
 0x2a0   : > { %v735_v1 = vmul.f32 1.442695, %v726_v63  ;;  %v733_v24 = vmul.f32 1.442695, %v725_v2 }
 0x2a2   : > { %1248 = vpow2.f32 %v735_v1  ;;  %v718_v3 = vpop.xlane.xlu1 %717 }
 0x2a3   : > { %1250 = vpow2.f32 %v733_v24  ;;  %v730_v58 = vsub.f32 %v1698_v61, %v718_v3 }
 0x2a5   : > { %v743_v43 = vmul.f32 1.442695, %v730_v58 }
 0x2a7   : > { %1252 = vpow2.f32 %v743_v43 }
 0x2ac   : > { %v1749_v7 = vpop.eup %1248 }
 0x2ad   : > { %v752_v9 = vsel %vm452_vm4, %v1749_v7, 0.0  ;;  %v1753_v12 = vpop.eup %1250 }
 0x2ae   : > { %753 = vadd.xlane.f32.xlu1 %v752_v9  ;;  %v749_v53 = vsel %vm452_vm4, %v1753_v12, 0.0 }
 0x2af   : > { %750 = vadd.xlane.f32.xlu0 %v749_v53 }
 0x2b1   : > { %v1757_v57 = vpop.eup %1252 }
 0x2b2   : > { %v764_v13 = vsel %vm452_vm4, %v1757_v57, 0.0 }
 0x2b3   : > { %765 = vadd.xlane.f32.xlu1 %v764_v13  ;;  %v712_v61 = vpop.xlane.xlu1 %711 }
 0x2b4   : > { %v728_v15 = vsub.f32 %v1708_v10, %v712_v61 }
 0x2b6   : > { %v739_v17 = vmul.f32 1.442695, %v728_v15 }
 0x2b8   : > { %1254 = vpow2.f32 %v739_v17 }
 0x2c2   : > { %v1762_v19 = vpop.eup %1254 }
 0x2c3   : > { %v758_v6 = vsel %vm452_vm4, %v1762_v19, 0.0 }
 0x2c4   : > { %759 = vadd.xlane.f32.xlu1 %v758_v6 }
 0x2ce   : > { %v715_v20 = vpop.xlane.xlu0 %714 }
 0x2cf   : > { %v729_v22 = vsub.f32 %v697_v11, %v715_v20 }
 0x2d1   : > { %v741_v23 = vmul.f32 1.442695, %v729_v22 }
 0x2d2   : > { %v709_v25 = vpop.xlane.xlu0 %708 }
 0x2d3   : > { %1256 = vpow2.f32 %v741_v23  ;;  %v727_v14 = vsub.f32 %v695_v41, %v709_v25 }
 0x2d5   : > { %v737_v33 = vmul.f32 1.442695, %v727_v14 }
 0x2d7   : > { %1258 = vpow2.f32 %v737_v33 }
 0x2dd   : > { %v1766_v34 = vpop.eup %1256 }
 0x2de   : > { %v761_v10 = vsel %vm452_vm4, %v1766_v34, 0.0 }
 0x2df   : > { %762 = vadd.xlane.f32.xlu0 %v761_v10 }
 0x2e1   : > { %v1770_v35 = vpop.eup %1258 }
 0x2e2   : > { %v755_v4 = vsel %vm452_vm4, %v1770_v35, 0.0 }
 0x2e3   : > { %756 = vadd.xlane.f32.xlu0 %v755_v4 }
 0x2e8   : > { %v724_v37 = vpop.xlane.xlu1 %723  ;;  %v721_v11 = vpop.xlane.xlu0 %720 }
 0x2e9   : > { %v732_v38 = vsub.f32 %v700_v30, %v724_v37  ;;  %v731_v40 = vsub.f32 %v699_v31, %v721_v11 }
 0x2eb   : > { %v747_v46 = vmul.f32 1.442695, %v732_v38  ;;  %v745_v41 = vmul.f32 1.442695, %v731_v40 }
 0x2ed   : > { %1260 = vpow2.f32 %v747_v46 }
 0x2ee   : > { %1262 = vpow2.f32 %v745_v41 }
 0x2f7   : > { %v1774_v27 = vpop.eup %1260 }
 0x2f8   : > { %v1776_v47 = vpop.eup %1262  ;;  %v770_v48 = vsel %vm452_vm4, %v1774_v27, 0.0 }
 0x2f9   : > { %771 = vadd.xlane.f32.xlu1 %v770_v48  ;;  %v767_v50 = vsel %vm452_vm4, %v1776_v47, 0.0 }
 0x2fa   : > { %768 = vadd.xlane.f32.xlu0 %v767_v50 }
 0x30a   : > { %841 = vrot.lane.b32.xlu1 %v1503_v52, %s1348_s13 }
 0x30e   : > { %835 = vrot.lane.b32.xlu1 %v1529_v5, %s1348_s13 }
 0x310   : > { %833 = vrot.lane.b32.xlu0 %v1490_v44, %s1348_s13 }
 0x312   : > { %837 = vrot.lane.b32.xlu1 %v1561_v26, %s1348_s13 }
 0x314   : > { %843 = vrot.lane.b32.xlu0 %v1518_v62, %s1348_s13 }
 0x316   : > { %839 = vrot.lane.b32.xlu1 %v1589_v51, %s1348_s13 }
 0x318   : > { %845 = vrot.lane.b32.xlu0 %v1602_v18, %s1348_s13 }
 0x31c   : > { %847 = vrot.lane.b32.xlu0 %v1580_v42, %s1348_s13  ;;  %s1284_s13 = sshll.u32 %s1349_s12, 4  ;;  %s1285_s13 = int_to_ptr.vmem [resolvable:$false] %s1284_s13 }
 0x31d   : > { %s1286_s14 = scalar_lea.vmem %s1285_s13, 2048  ;;  %p1287_p0 = scmp.lt.s32.totalorder %s1843_s28, %s1285_s13 }
 0x31e   : > { %p1288_p1 = scmp.lt.s32.totalorder %s1286_s14, %s1280_s11 }
 0x320   : > { %p1289_p2 = por %p1288_p1, %p1287_p0 }
 0x322   : > { %p1290_p3 = pnand %p1289_p2, %p1283_p13 }
 0x33b   : > { %v754_v52 = vpop.xlane.xlu1 %753 }
 0x33c   : > { %v751_v29 = vpop.xlane.xlu0 %750  ;;  %1264 = vrcp.f32 %v754_v52 }
 0x33d   : > { %1266 = vrcp.f32 %v751_v29 }
 0x340   : > { %v766_v30 = vpop.xlane.xlu1 %765 }
 0x341   : > { %1268 = vrcp.f32 %v766_v30 }
 0x346   : > { %v1265_v5 = vpop.eup %1264 }
 0x347   : > { %v1267_v31 = vpop.eup %1266  ;;  %v782_v44 = vmul.f32 %v1265_v5, %v1749_v7 }
 0x348   : > { %v781_v59 = vmul.f32 %v1267_v31, %v1753_v12 }
 0x349   : > { %v790_v51 = vmul.f32 %v782_v44, %v1667_v36 }
 0x34a   : > { %v789_v62 = vmul.f32 %v781_v59, %v1671_v45 }
 0x34b   : > { %v798_v60 = vsel %vm452_vm4, %v790_v51, 0.0  ;;  %v1269_v63 = vpop.eup %1268 }
 0x34c   : > { %v797_v42 = vsel %vm452_vm4, %v789_v62, 0.0  ;;  %v786_v1 = vmul.f32 %v1269_v63, %v1757_v57 }
 0x34d   : > { %v799_v0 = vadd.f32 %v798_v60, %v797_v42 }
 0x34e   : > { %v794_v36 = vmul.f32 %v786_v1, %v1683_v32 }
 0x34f   : > { %v800_v24 = vrot.slane %v799_v0, 4 }
 0x350   : > { %v816_v53 = vsel %vm452_vm4, %v794_v36, 0.0 }
 0x351   : > { %v760_v26 = vpop.xlane.xlu1 %759  ;;  %v801_v7 = vadd.f32 %v800_v24, %v799_v0 }
 0x352   : > { %1270 = vrcp.f32 %v760_v26 }
 0x353   : > { %v802_v15 = vrot.slane %v801_v7, 2 }
 0x355   : > { %v803_v22 = vadd.f32 %v802_v15, %v801_v7 }
 0x357   : > { %v804_v10 = vrot.slane %v803_v22, 1 }
 0x359   : > { %v805_v38 = vadd.f32 %v804_v10, %v803_v22  ;;  %v874_v22 = vld [vmem:[#allocation2 + $0x38] sm:$0xff] }
 0x35c   : > { %v1271_v2 = vpop.eup %1270 }
 0x35d   : > { %v784_v58 = vmul.f32 %v1271_v2, %v1762_v19 }
 0x35f   : > { %v792_v57 = vmul.f32 %v784_v58, %v1702_v8  ;;  %v868_v58 = vld [vmem:[#allocation2 + $0x8] sm:$0xff] }
 0x361   : > { %v807_v6 = vsel %vm452_vm4, %v792_v57, 0.0 }
 0x36c   : > { %v763_v18 = vpop.xlane.xlu0 %762 }
 0x36d   : > { %1272 = vrcp.f32 %v763_v18 }
 0x370   : > { %v757_v49 = vpop.xlane.xlu0 %756 }
 0x371   : > { %1274 = vrcp.f32 %v757_v49 }
 0x377   : > { %v1273_v3 = vpop.eup %1272 }
 0x378   : > { %v785_v45 = vmul.f32 %v1273_v3, %v1766_v34 }
 0x37a   : > { %v793_v43 = vmul.f32 %v785_v45, %v1712_v56 }
 0x37b   : > { %v1275_v9 = vpop.eup %1274 }
 0x37c   : > { %v783_v12 = vmul.f32 %v1275_v9, %v1770_v35  ;;  %v815_v13 = vsel %vm452_vm4, %v793_v43, 0.0  ;;  %v872_v43 = vld [vmem:[#allocation2 + $0x28] sm:$0xff] }
 0x37d   : > { %v817_v61 = vadd.f32 %v816_v53, %v815_v13 }
 0x37e   : > { %v791_v17 = vmul.f32 %v783_v12, %v1717_v21  ;;  %v867_v12 = vld [vmem:[#allocation2] sm:$0xff] }
 0x37f   : > { %v818_v19 = vrot.slane %v817_v61, 4 }
 0x380   : > { %v806_v32 = vsel %vm452_vm4, %v791_v17, 0.0  ;;  %v870_v17 = vld [vmem:[#allocation2 + $0x18] sm:$0xff] }
 0x381   : > { %v819_v56 = vadd.f32 %v818_v19, %v817_v61  ;;  %v808_v20 = vadd.f32 %v807_v6, %v806_v32  ;;  %v871_v61 = vld [vmem:[#allocation2 + $0x20] sm:$0xff] }
 0x383   : > { %v820_v23 = vrot.slane %v819_v56, 2  ;;  %v809_v25 = vrot.slane %v808_v20, 4 }
 0x385   : > { %v821_v14 = vadd.f32 %v820_v23, %v819_v56  ;;  %v810_v33 = vadd.f32 %v809_v25, %v808_v20  ;;  %v869_v56 = vld [vmem:[#allocation2 + $0x10] sm:$0xff] }
 0x386   : > { %v772_v34 = vpop.xlane.xlu1 %771 }
 0x387   : > { %1276 = vrcp.f32 %v772_v34  ;;  %v769_v8 = vpop.xlane.xlu0 %768  ;;  %v822_v35 = vrot.slane %v821_v14, 1  ;;  %v811_v4 = vrot.slane %v810_v33, 2 }
 0x388   : > { %1278 = vrcp.f32 %v769_v8 }
 0x389   : > { %v823_v21 = vadd.f32 %v822_v35, %v821_v14  ;;  %v812_v37 = vadd.f32 %v811_v4, %v810_v33  ;;  %v873_v33 = vld [vmem:[#allocation2 + $0x30] sm:$0xff] }
 0x38a   : > { %v842_v11 = vpop.permute.xlu1 %841 }
 0x38b   : > { %v861_v40 = vmul.f32 %v842_v11, %v823_v21  ;;  %v834_v46 = vpop.permute.xlu0 %833  ;;  %v813_v48 = vrot.slane %v812_v37, 1 }
 0x38c   : > { %v857_v41 = vmul.f32 %v834_v46, %v805_v38 }
 0x38d   : > { %1149 = vmatprep.mubr.msk.f32.mxu1 %vm452_vm4, %v861_v40  ;;  %v814_v29 = vadd.f32 %v813_v48, %v812_v37 }
 0x38e   : > { %1143 = vmatprep.mubr.msk.f32.mxu0 %vm452_vm4, %v857_v41  ;;  %v836_v50 = vpop.permute.xlu1 %835 }
 0x38f   : > { %v858_v16 = vmul.f32 %v836_v50, %v805_v38  ;;  %v844_v54 = vpop.permute.xlu0 %843 }
 0x390   : > { %v862_v39 = vmul.f32 %v844_v54, %v823_v21 }
 0x391   : > { %v1277_v52 = vpop.eup %1276  ;;  %1144 = vmatmul.mubr.msk.f32.vlgmr.msra.gmra.mrb[0].mxu0 %vm452_vm4, %v858_v16 }
 0x392   : > { %v1279_v5 = vpop.eup %1278  ;;  %v788_v31 = vmul.f32 %v1277_v52, %v1774_v27  ;;  %1150 = vmatmul.mubr.msk.f32.vlgmr.msra.gmra.mrb[0].mxu1 %vm452_vm4, %v862_v39  ;;  %v838_v30 = vpop.permute.xlu1 %837 }
 0x393   : > { %v787_v44 = vmul.f32 %v1279_v5, %v1776_v47  ;;  %v859_v59 = vmul.f32 %v838_v30, %v814_v29  ;;  %v846_v0 = vpop.permute.xlu0 %845 }
 0x394   : > { %v796_v26 = vmul.f32 %v788_v31, %v1734_v55 }
 0x395   : > { %v795_v62 = vmul.f32 %v787_v44, %v1732_v28  ;;  %1146 = vmatprep.mubr.msk.f32.mxu0 %vm452_vm4, %v859_v59 }
 0x396   : > { %v825_v51 = vsel %vm452_vm4, %v796_v26, 0.0  ;;  %v840_v18 = vpop.permute.xlu1 %839 }
 0x397   : > { %v824_v42 = vsel %vm452_vm4, %v795_v62, 0.0  ;;  %v860_v60 = vmul.f32 %v840_v18, %v814_v29  ;;  %v848_v2 = vpop.permute.xlu0 %847 }
 0x398   : > { %v826_v27 = vadd.f32 %v825_v51, %v824_v42 }
 0x399   : > { %1147 = vmatmul.mubr.msk.f32.gmra.mrb[2].mxu0 %vm452_vm4, %v860_v60 }
 0x39a   : > { %v827_v49 = vrot.slane %v826_v27, 4 }
 0x39c   : > { %v828_v47 = vadd.f32 %v827_v49, %v826_v27 }
 0x39e   : > { %v829_v63 = vrot.slane %v828_v47, 2 }
 0x3a0   : > { %v830_v55 = vadd.f32 %v829_v63, %v828_v47 }
 0x3a2   : > { %v831_v1 = vrot.slane %v830_v55, 1 }
 0x3a4   : > { %v832_v28 = vadd.f32 %v831_v1, %v830_v55 }
 0x3a6   : > { %v863_v24 = vmul.f32 %v846_v0, %v832_v28  ;;  %v864_v3 = vmul.f32 %v848_v2, %v832_v28 }
 0x3a8   : > { %1152 = vmatprep.mubr.msk.f32.mxu1 %vm452_vm4, %v863_v24 }
 0x3a9   : > { %1153 = vmatmul.mubr.msk.f32.gmra.mrb[2].mxu1 %vm452_vm4, %v864_v3 }
 0x464   : > { %v1145_v45 = vpop.f32.mrb[0].mxu0 }
 0x465   : > { %v971_v36 = vadd.f32 %v1145_v45, %v868_v58  ;;  %v1151_v7 = vpop.f32.mrb[0].mxu1  ;;  %v965_v9 = vpop.f32.mrb[1].mxu0 }
 0x466   : > { %v991_v53 = vadd.f32 %v1151_v7, %v872_v43  ;;  %v966_v13 = vadd.f32 %v965_v9, %v867_v12  ;;  %v985_v57 = vpop.f32.mrb[1].mxu1 }
 0x467   : > { %1005 = vst.msk [vmem:[%s261_s20 + $0x8] sm:$0xff] %vm452_vm4, %v971_v36  ;;  %v986_v15 = vadd.f32 %v985_v57, %v871_v61 }
 0x468   : > { %1009 = vst.msk [vmem:[%s261_s20 + $0x28] sm:$0xff] %vm452_vm4, %v991_v53  ;;  %1004 = vst.msk [vmem:[%s261_s20] sm:$0xff] %vm452_vm4, %v966_v13 }
 0x469   : > { %1008 = vst.msk [vmem:[%s261_s20 + $0x20] sm:$0xff] %vm452_vm4, %v986_v15 }
 0x46c   : > { %v1148_v19 = vpop.f32.mrb[2].mxu0 }
 0x46d   : > { %v981_v6 = vadd.f32 %v1148_v19, %v870_v17  ;;  %v975_v32 = vpop.f32.mrb[3].mxu0 }
 0x46e   : > { %v976_v20 = vadd.f32 %v975_v32, %v869_v56 }
 0x46f   : > { %1007 = vst.msk [vmem:[%s261_s20 + $0x18] sm:$0xff] %vm452_vm4, %v981_v6 }
 0x470   : > { %1006 = vst.msk [vmem:[%s261_s20 + $0x10] sm:$0xff] %vm452_vm4, %v976_v20 }
 0x47c   : > { %v1154_v23 = vpop.f32.mrb[2].mxu1 }
 0x47d   : > { %v1001_v25 = vadd.f32 %v1154_v23, %v874_v22  ;;  %v995_v14 = vpop.f32.mrb[3].mxu1 }
 0x47e   : > { %v996_v34 = vadd.f32 %v995_v14, %v873_v33 }
 0x47f   : > { %1011 = vst.msk [vmem:[%s261_s20 + $0x38] sm:$0xff] %vm452_vm4, %v1001_v25 }
 0x480   : > { %1010 = vst.msk [vmem:[%s261_s20 + $0x30] sm:$0xff] %vm452_vm4, %v996_v34 }
 0x481   : > { %1293 = shalt.err (!%p1290_p3)
}
 0x482   : > { %s1294_s15 = scalar_lea.hbm %s1841_s10, 1024  ;;  %s1298_s18 = scalar_lea.hbm %s1896_s6, 2048 }
 0x483   : > { %p1295_p4 = scmp.ne.s32.totalorder %s1841_s10, %s1294_s15  ;;  %p1299_p9 = scmp.lt.u32.totalorder %s1841_s10, %s1896_s6 }
 0x484   : > { %p1300_p10 = scmp.lt.u32.totalorder %s1298_s18, %s1294_s15  ;;  %p1302_p12 = scmp.lt.u32.totalorder %s1294_s15, %s1841_s10 }
 0x485   : > { %p1296_p7 = pnand %p1295_p4, %p1425_p5 }
 0x486   : > { %p1301_p11 = por %p1300_p10, %p1299_p9 }
 0x487   : > { %p1297_p8 = pneg %p1296_p7 }
 0x488   : > { %p1303_p13 = por %p1302_p12, %p1301_p11 }
 0x48a   : > { %p1304_p0 = pnand %p1303_p13, %p1297_p8 }
 0x48c   : > { %1307 = shalt.err (!%p1304_p0)
}
 0x48d   : > { %s1350_s26 = smov 128   ;;  %s1351_s29 = smov 8  }
 0x48e   : > { %1161 = dma.vmem_to_hbm [thread:$0]  (%p1425_p5), %s1843_s28, 1024, %s1841_s10, %s1849_s25, %s1350_s26, %s1350_s26, %s1351_s29  }
 0x48f PF: > { %p1167_p1 = scmp.ge.s32.totalorder %s1342_s24, 2  ;;  %s1042_s9 = sand.u32 1, %s1330_s21  }
 0x490   : > { %s1043_s11 = scalar_lea.sflag [#allocation4], %s1042_s9 }
 0x491   : > { %p1164_p2 = pnand %p1167_p1, %p1429_p6 }
 0x493   : > { %1325 = dma.done.wait (!%p1164_p2), %s1043_s11, 1024  }
 0x494   : > { %1327 = vsyncadd (!%p1164_p2), %s1043_s11, 4294966272  ;;  %p16_p3 = scmp.ge.s32.totalorder %s1412_s27, 4   ;;  %s1907_s21 = smov %s1334_s22 }
 0x495   : > { %s1908_s22 = smov %s1338_s23  ;;  %s1909_s23 = smov %s1423_s30 }
 0x496   : > { %s1910_s24 = smov %s1412_s27  ;;  %18 = sbr.rel (!%p16_p3) target bundleno = 3 (0x3), region = 82 }
 0x49d   :  { %1048 = vsyncpa [#allocation4], 1 }
 0x49e   :  { %1050 = vsyncpa [#allocation4 + $0x1], 1 }

</bundles_post_ra>
